<compile_context>
chip_gen: v6e
topology: v6e:2x2x1
jax: 0.10.0
libtpu: 0.0.40
codegen_flags: <defaults>
</compile_context>

<pallas_src>
import functools

import jax
import jax.numpy as jnp
from jax.experimental import pallas as pl
from jax.experimental.pallas import tpu as pltpu

LN_EPS = 1e-5  # nn.LayerNorm default


def _round_up(x, m):
    return ((x + m - 1) // m) * m


def _ffn_kernel(x_ref, w1_ref, b1_ref, w2_ref, b2_ref, gamma_ref, beta_ref,
                o_ref, acc_ref):
    k = pl.program_id(1)

    @pl.when(k == 0)
    def _init():
        acc_ref[...] = jnp.zeros_like(acc_ref)

    # ---- w1 slice: x @ W1[:, k*TF:(k+1)*TF] + b1, ReLU ----
    # Matmul operands stay in the input dtype (bf16 -> bf16 MXU path);
    # accumulation is f32 via preferred_element_type.
    x = x_ref[...]                                                    # [TM, D]
    h = jnp.dot(x, w1_ref[...], preferred_element_type=jnp.float32)  # [TM, TF]
    h = jnp.maximum(h + b1_ref[...].astype(jnp.float32), 0.0)

    # ---- partial w2: h @ W2[k*TF:(k+1)*TF, :] accumulated in f32 scratch ----
    acc_ref[...] += jnp.dot(h.astype(w2_ref.dtype), w2_ref[...],
                            preferred_element_type=jnp.float32)       # [TM, D]

    @pl.when(k == pl.num_programs(1) - 1)
    def _finalize():
        y = acc_ref[...] + b2_ref[...].astype(jnp.float32)
        # ---- dropout(p=0.0) == identity ----
        # ---- residual + LayerNorm over last dim (f32 math) ----
        r = x.astype(jnp.float32) + y
        mean = jnp.mean(r, axis=-1, keepdims=True)
        cen = r - mean
        var = jnp.mean(cen * cen, axis=-1, keepdims=True)
        norm = cen * jax.lax.rsqrt(var + LN_EPS)
        out = (norm * gamma_ref[...].astype(jnp.float32)
               + beta_ref[...].astype(jnp.float32))
        o_ref[...] = out.astype(o_ref.dtype)


@functools.partial(jax.jit, static_argnames=("tile_m", "tile_f"))
def position_wise_ffn(z, w1, b1, w2, b2, gamma, beta, *,
                      tile_m=256, tile_f=512):
    """z: [B, S, D].  Returns layer_norm(z + w2(relu(w1(z))))."""
    B, S, D = z.shape
    F = w1.shape[1]
    rows = B * S

    # Row tile: large (MXU-friendly), shrink for tiny inputs; pad rows instead
    # of asserting divisibility.
    tm = min(tile_m, _round_up(rows, 8))
    rows_p = _round_up(rows, tm)
    # FFN tile: multiple of 128 lanes; pad F if needed (exact: relu(0)=0 and
    # zero W2 rows contribute nothing).
    tf = min(tile_f, _round_up(F, 128))
    f_p = _round_up(F, tf)

    x2d = z.reshape(rows, D)
    if rows_p != rows:
        x2d = jnp.pad(x2d, ((0, rows_p - rows), (0, 0)))

    w1_p, b1_p, w2_p = w1, b1, w2
    if f_p != F:
        w1_p = jnp.pad(w1, ((0, 0), (0, f_p - F)))
        b1_p = jnp.pad(b1, ((0, f_p - F),))
        w2_p = jnp.pad(w2, ((0, f_p - F), (0, 0)))

    b1_2d = b1_p.reshape(1, f_p)
    b2_2d = b2.reshape(1, D)
    gamma_2d = gamma.reshape(1, D)
    beta_2d = beta.reshape(1, D)

    grid = (rows_p // tm, f_p // tf)

    isz = jnp.dtype(z.dtype).itemsize
    cost = pl.CostEstimate(
        flops=4 * rows * D * F,                       # two GEMMs
        transcendentals=rows,                         # rsqrt per row
        bytes_accessed=(2 * rows * D + 2 * D * F) * isz,
    )

    out2d = pl.pallas_call(
        _ffn_kernel,
        out_shape=jax.ShapeDtypeStruct((rows_p, D), z.dtype),
        grid_spec=pltpu.PrefetchScalarGridSpec(
            num_scalar_prefetch=0,
            grid=grid,
            in_specs=[
                pl.BlockSpec((tm, D), lambda i, k: (i, 0)),    # x rows
                pl.BlockSpec((D, tf), lambda i, k: (0, k)),    # W1 column slab
                pl.BlockSpec((1, tf), lambda i, k: (0, k)),    # b1 slab
                pl.BlockSpec((tf, D), lambda i, k: (k, 0)),    # W2 row slab
                pl.BlockSpec((1, D), lambda i, k: (0, 0)),     # b2
                pl.BlockSpec((1, D), lambda i, k: (0, 0)),     # gamma
                pl.BlockSpec((1, D), lambda i, k: (0, 0)),     # beta
            ],
            out_specs=pl.BlockSpec((tm, D), lambda i, k: (i, 0)),
            scratch_shapes=[pltpu.VMEM((tm, D), jnp.float32)],  # f32 accumulator
        ),
        compiler_params=pltpu.CompilerParams(
            dimension_semantics=("parallel", "arbitrary"),
            vmem_limit_bytes=48 * 1024 * 1024,
        ),
        cost_estimate=cost,
    )(x2d, w1_p, b1_2d, w2_p, b2_2d, gamma_2d, beta_2d)

    return out2d[:rows].reshape(B, S, D)


def _reference(z, w1, b1, w2, b2, gamma, beta):
    h = jnp.maximum(z @ w1 + b1, 0.0)
    y = h @ w2 + b2
    r = z + y
    mean = jnp.mean(r, axis=-1, keepdims=True)
    var = jnp.mean((r - mean) ** 2, axis=-1, keepdims=True)
    return (r - mean) * jax.lax.rsqrt(var + LN_EPS) * gamma + beta


if __name__ == "__main__":
    # Small shapes consistent with the module (model_dim, ffn_dim scaled down).
    batch, seq, model_dim, ffn_dim = 2, 8, 32, 128

    key = jax.random.PRNGKey(0)
    kz, k1, kb1, k2, kb2 = jax.random.split(key, 5)

    z = jax.random.normal(kz, (batch, seq, model_dim), dtype=jnp.float32)

    # Deterministic synthetic params (nn.Linear / LayerNorm shapes).
    w1 = jax.random.normal(k1, (model_dim, ffn_dim), jnp.float32) * 0.05
    b1 = jax.random.normal(kb1, (ffn_dim,), jnp.float32) * 0.05
    w2 = jax.random.normal(k2, (ffn_dim, model_dim), jnp.float32) * 0.05
    b2 = jax.random.normal(kb2, (model_dim,), jnp.float32) * 0.05
    gamma = jnp.ones((model_dim,), jnp.float32)
    beta = jnp.zeros((model_dim,), jnp.float32)

    out = position_wise_ffn(z, w1, b1, w2, b2, gamma, beta)
    out = jax.block_until_ready(out)

    ref = _reference(z, w1, b1, w2, b2, gamma, beta)
    assert out.shape == z.shape
    assert jnp.allclose(out, ref, atol=1e-4, rtol=1e-4), "mismatch vs reference"

    print("KERNEL_OK")
</pallas_src>

<mosaic_0001>
module attributes {stable_mosaic.version = 11 : i64} {
  func.func @_ffn_kernel(%arg0: i32, %arg1: i32, %arg2: memref<16x32xf32, #tpu.memory_space<vmem>>, %arg3: memref<32x128xf32, #tpu.memory_space<vmem>>, %arg4: memref<1x128xf32, #tpu.memory_space<vmem>>, %arg5: memref<128x32xf32, #tpu.memory_space<vmem>>, %arg6: memref<1x32xf32, #tpu.memory_space<vmem>>, %arg7: memref<1x32xf32, #tpu.memory_space<vmem>>, %arg8: memref<1x32xf32, #tpu.memory_space<vmem>>, %arg9: memref<16x32xf32, #tpu.memory_space<vmem>>, %arg10: memref<16x32xf32, #tpu.memory_space<vmem>>) attributes {dimension_semantics = [#tpu.dimension_semantics<parallel>, #tpu.dimension_semantics<arbitrary>], iteration_bounds = array<i64: 1, 1>, scalar_prefetch = 0 : i64, scratch_operands = 1 : i64, tpu.core_type = #tpu.core_type<tc>, window_params = [{transform_indices = @transform_0, window_bounds = array<i64: 16, 32>}, {transform_indices = @transform_1, window_bounds = array<i64: 32, 128>}, {transform_indices = @transform_2, window_bounds = array<i64: 1, 128>}, {transform_indices = @transform_3, window_bounds = array<i64: 128, 32>}, {pipeline_mode = #tpu.pipeline_mode<synchronous>, transform_indices = @transform_4, window_bounds = array<i64: 1, 32>}, {pipeline_mode = #tpu.pipeline_mode<synchronous>, transform_indices = @transform_5, window_bounds = array<i64: 1, 32>}, {pipeline_mode = #tpu.pipeline_mode<synchronous>, transform_indices = @transform_6, window_bounds = array<i64: 1, 32>}, {transform_indices = @transform_7, window_bounds = array<i64: 16, 32>}]} {
    %c0_i32 = arith.constant 0 : i32
    %0 = arith.cmpi eq, %arg1, %c0_i32 : i32
    %1 = arith.extui %0 : i1 to i32
    %c0_i32_0 = arith.constant 0 : i32
    %2 = arith.cmpi ne, %1, %c0_i32_0 : i32
    scf.if %2 {
      %cst_16 = arith.constant 0.000000e+00 : f32
      %19 = vector.broadcast %cst_16 : f32 to vector<16x32xf32>
      %c0_17 = arith.constant 0 : index
      %c0_18 = arith.constant 0 : index
      %20 = vector.load %arg10[%c0_17, %c0_18] : memref<16x32xf32, #tpu.memory_space<vmem>>, vector<16x32xf32>
      tpu.vector_store %arg10[%c0_17, %c0_18], %19 {strides = array<i32>} : memref<16x32xf32, #tpu.memory_space<vmem>>, vector<16x32xf32>,
    } else {
    }
    %c0 = arith.constant 0 : index
    %c0_1 = arith.constant 0 : index
    %3 = vector.load %arg2[%c0, %c0_1] : memref<16x32xf32, #tpu.memory_space<vmem>>, vector<16x32xf32>
    %c0_2 = arith.constant 0 : index
    %c0_3 = arith.constant 0 : index
    %4 = vector.load %arg3[%c0_2, %c0_3] : memref<32x128xf32, #tpu.memory_space<vmem>>, vector<32x128xf32>
    %cst = arith.constant dense<0.000000e+00> : vector<16x128xf32>
    %5 = tpu.matmul %3, %4, %cst {dimension_numbers = #tpu.dot_dimension_numbers<[1], [0], [0], [1], [0, 0, 1, 1], [], []>} : vector<16x32xf32>, vector<32x128xf32>, vector<16x128xf32> -> vector<16x128xf32>
    %c0_4 = arith.constant 0 : index
    %c0_5 = arith.constant 0 : index
    %6 = vector.load %arg4[%c0_4, %c0_5] : memref<1x128xf32, #tpu.memory_space<vmem>>, vector<1x128xf32>
    %7 = vector.broadcast %6 : vector<1x128xf32> to vector<16x128xf32>
    %8 = arith.addf %5, %7 : vector<16x128xf32>
    %cst_6 = arith.constant 0.000000e+00 : f32
    %9 = vector.broadcast %cst_6 : f32 to vector<16x128xf32>
    %10 = arith.maximumf %8, %9 : vector<16x128xf32>
    %c0_7 = arith.constant 0 : index
    %c0_8 = arith.constant 0 : index
    %11 = vector.load %arg10[%c0_7, %c0_8] : memref<16x32xf32, #tpu.memory_space<vmem>>, vector<16x32xf32>
    %c0_9 = arith.constant 0 : index
    %c0_10 = arith.constant 0 : index
    %12 = vector.load %arg5[%c0_9, %c0_10] : memref<128x32xf32, #tpu.memory_space<vmem>>, vector<128x32xf32>
    %cst_11 = arith.constant dense<0.000000e+00> : vector<16x32xf32>
    %13 = tpu.matmul %10, %12, %cst_11 {dimension_numbers = #tpu.dot_dimension_numbers<[1], [0], [0], [1], [0, 0, 1, 1], [], []>} : vector<16x128xf32>, vector<128x32xf32>, vector<16x32xf32> -> vector<16x32xf32>
    %14 = arith.addf %11, %13 : vector<16x32xf32>
    %c0_12 = arith.constant 0 : index
    %c0_13 = arith.constant 0 : index
    %15 = vector.load %arg10[%c0_12, %c0_13] : memref<16x32xf32, #tpu.memory_space<vmem>>, vector<16x32xf32>
    tpu.vector_store %arg10[%c0_12, %c0_13], %14 {strides = array<i32>} : memref<16x32xf32, #tpu.memory_space<vmem>>, vector<16x32xf32>,
    %c0_i32_14 = arith.constant 0 : i32
    %16 = arith.cmpi eq, %arg1, %c0_i32_14 : i32
    %17 = arith.extui %16 : i1 to i32
    %c0_i32_15 = arith.constant 0 : i32
    %18 = arith.cmpi ne, %17, %c0_i32_15 : i32
    scf.if %18 {
      %c0_16 = arith.constant 0 : index
      %c0_17 = arith.constant 0 : index
      %19 = vector.load %arg10[%c0_16, %c0_17] : memref<16x32xf32, #tpu.memory_space<vmem>>, vector<16x32xf32>
      %c0_18 = arith.constant 0 : index
      %c0_19 = arith.constant 0 : index
      %20 = vector.load %arg6[%c0_18, %c0_19] : memref<1x32xf32, #tpu.memory_space<vmem>>, vector<1x32xf32>
      %21 = vector.broadcast %20 : vector<1x32xf32> to vector<16x32xf32>
      %22 = arith.addf %19, %21 : vector<16x32xf32>
      %23 = arith.addf %3, %22 : vector<16x32xf32>
      %cst_20 = arith.constant dense<0.000000e+00> : vector<16xf32>
      %24 = vector.multi_reduction <add>, %23, %cst_20 [1] : vector<16x32xf32> to vector<16xf32>
      %25 = vector.shape_cast %24 : vector<16xf32> to vector<16x1xf32>
      %cst_21 = arith.constant 3.200000e+01 : f32
      %26 = vector.broadcast %cst_21 : f32 to vector<16x1xf32>
      %27 = arith.divf %25, %26 : vector<16x1xf32>
      %28 = vector.broadcast %27 : vector<16x1xf32> to vector<16x32xf32>
      %29 = arith.subf %23, %28 : vector<16x32xf32>
      %30 = arith.mulf %29, %29 : vector<16x32xf32>
      %cst_22 = arith.constant dense<0.000000e+00> : vector<16xf32>
      %31 = vector.multi_reduction <add>, %30, %cst_22 [1] : vector<16x32xf32> to vector<16xf32>
      %32 = vector.shape_cast %31 : vector<16xf32> to vector<16x1xf32>
      %cst_23 = arith.constant 3.200000e+01 : f32
      %33 = vector.broadcast %cst_23 : f32 to vector<16x1xf32>
      %34 = arith.divf %32, %33 : vector<16x1xf32>
      %cst_24 = arith.constant 9.99999974E-6 : f32
      %35 = vector.broadcast %cst_24 : f32 to vector<16x1xf32>
      %36 = arith.addf %34, %35 : vector<16x1xf32>
      %37 = math.rsqrt %36 : vector<16x1xf32>
      %38 = vector.broadcast %37 : vector<16x1xf32> to vector<16x32xf32>
      %39 = arith.mulf %29, %38 : vector<16x32xf32>
      %c0_25 = arith.constant 0 : index
      %c0_26 = arith.constant 0 : index
      %40 = vector.load %arg7[%c0_25, %c0_26] : memref<1x32xf32, #tpu.memory_space<vmem>>, vector<1x32xf32>
      %41 = vector.broadcast %40 : vector<1x32xf32> to vector<16x32xf32>
      %42 = arith.mulf %39, %41 : vector<16x32xf32>
      %c0_27 = arith.constant 0 : index
      %c0_28 = arith.constant 0 : index
      %43 = vector.load %arg8[%c0_27, %c0_28] : memref<1x32xf32, #tpu.memory_space<vmem>>, vector<1x32xf32>
      %44 = vector.broadcast %43 : vector<1x32xf32> to vector<16x32xf32>
      %45 = arith.addf %42, %44 : vector<16x32xf32>
      %c0_29 = arith.constant 0 : index
      %c0_30 = arith.constant 0 : index
      %46 = vector.load %arg9[%c0_29, %c0_30] : memref<16x32xf32, #tpu.memory_space<vmem>>, vector<16x32xf32>
      tpu.vector_store %arg9[%c0_29, %c0_30], %45 {strides = array<i32>} : memref<16x32xf32, #tpu.memory_space<vmem>>, vector<16x32xf32>,
    } else {
    }
    return
  }
  func.func @transform_0(%arg0: i32, %arg1: i32) -> (i32, i32) {
    %c0_i32 = arith.constant 0 : i32
    %c0_i32_0 = arith.constant 0 : i32
    return %arg0, %c0_i32 : i32, i32
  }
  func.func @transform_1(%arg0: i32, %arg1: i32) -> (i32, i32) {
    %c0_i32 = arith.constant 0 : i32
    %c0_i32_0 = arith.constant 0 : i32
    return %c0_i32, %arg1 : i32, i32
  }
  func.func @transform_2(%arg0: i32, %arg1: i32) -> (i32, i32) {
    %c0_i32 = arith.constant 0 : i32
    %c0_i32_0 = arith.constant 0 : i32
    return %c0_i32, %arg1 : i32, i32
  }
  func.func @transform_3(%arg0: i32, %arg1: i32) -> (i32, i32) {
    %c0_i32 = arith.constant 0 : i32
    %c0_i32_0 = arith.constant 0 : i32
    return %arg1, %c0_i32 : i32, i32
  }
  func.func @transform_4(%arg0: i32, %arg1: i32) -> (i32, i32) {
    %c0_i32 = arith.constant 0 : i32
    %c0_i32_0 = arith.constant 0 : i32
    %c0_i32_1 = arith.constant 0 : i32
    return %c0_i32, %c0_i32_0 : i32, i32
  }
  func.func @transform_5(%arg0: i32, %arg1: i32) -> (i32, i32) {
    %c0_i32 = arith.constant 0 : i32
    %c0_i32_0 = arith.constant 0 : i32
    %c0_i32_1 = arith.constant 0 : i32
    return %c0_i32, %c0_i32_0 : i32, i32
  }
  func.func @transform_6(%arg0: i32, %arg1: i32) -> (i32, i32) {
    %c0_i32 = arith.constant 0 : i32
    %c0_i32_0 = arith.constant 0 : i32
    %c0_i32_1 = arith.constant 0 : i32
    return %c0_i32, %c0_i32_0 : i32, i32
  }
  func.func @transform_7(%arg0: i32, %arg1: i32) -> (i32, i32) {
    %c0_i32 = arith.constant 0 : i32
    %c0_i32_0 = arith.constant 0 : i32
    return %arg0, %c0_i32 : i32, i32
  }
}

</mosaic_0001>

<bundles_post_ra>
// kernel: position_wise_ffn.1
= control target key start
LH: loop header
LB: loop body
LE: loop exit
PB: predicated region body
PF: predicated region fallthrough
CT: control target
= control target key end

     0   :  { %vm31_vm0 = vcmask 261120   ;;  %s558_s0 = inlined_call_operand.vmem [shape: f32[16,32], index: 0, kind: input, shape index: {}]   ;;  %s559_s1 = inlined_call_operand.vmem [shape: f32[32,128], index: 1, kind: input, shape index: {}]   ;;  %s560_s2 = inlined_call_operand.vmem [shape: f32[1,128], index: 2, kind: input, shape index: {}]   ;;  %s561_s3 = inlined_call_operand.vmem [shape: f32[128,32], index: 3, kind: input, shape index: {}]   ;;  %s562_s4 = inlined_call_operand.vmem [shape: f32[1,32], index: 4, kind: input, shape index: {}]   ;;  %s563_s5 = inlined_call_operand.vmem [shape: f32[1,32], index: 5, kind: input, shape index: {}]   ;;  %s564_s6 = inlined_call_operand.vmem [shape: f32[1,32], index: 6, kind: input, shape index: {}]   ;;  %s565_s7 = inlined_call_operand.hbm [shape: f32[16,32], index: 7, kind: output, shape index: {}]  }
   0x1   :  { %v39_v0 = vld [vmem:[%s559_s1 + $0x18] sm:$0xff]  ;;  %v38_v1 = vld [vmem:[%s559_s1 + $0x10] sm:$0xff]  ;;  %v466_v2 = vld [vmem:[%s558_s0] sm:$0xff] }
   0x2   :  { %337 = vmatprep.subr.mxu0 %v39_v0  ;;  %v37_v3 = vld [vmem:[%s559_s1 + $0x8] sm:$0xff]  ;;  %345 = vmatprep.mubr.msk.f32.mxu0 %vm31_vm0, %v466_v2  ;;  %v148_v4 = vld [vmem:[%s561_s3 + $0x78] sm:$0xff]  ;;  %v147_v5 = vld [vmem:[%s561_s3 + $0x70] sm:$0xff] }
   0x3   :  { %338 = vmatpush3.msra.mxu0 %v39_v0  ;;  %348 = vmatprep.subr.mxu1 %v148_v4  ;;  %v36_v6 = vld [vmem:[%s559_s1] sm:$0xff]  ;;  %v146_v7 = vld [vmem:[%s561_s3 + $0x68] sm:$0xff] }
   0x4   :  { %339 = vmatprep.subr.mxu0 %v38_v1  ;;  %349 = vmatpush3.msra.mxu1 %v148_v4  ;;  %v488_v8 = vld [vmem:[%s558_s0 + $0x8] sm:$0xff]  ;;  %v145_v9 = vld [vmem:[%s561_s3 + $0x60] sm:$0xff] }
   0x5   :  { %340 = vmatpush3.msra.mxu0 %v38_v1  ;;  %350 = vmatprep.subr.mxu1 %v147_v5 }
   0x6   :  { %341 = vmatprep.subr.mxu0 %v37_v3  ;;  %351 = vmatpush3.msra.mxu1 %v147_v5 }
   0x7   :  { %342 = vmatpush3.msra.mxu0 %v37_v3 }
   0x8   :  { %12 = vsyncpa [#allocation4], 0  ;;  %343 = vmatprep.subr.mxu0 %v36_v6  ;;  %352 = vmatprep.subr.mxu1 %v146_v7  ;;  %v144_v10 = vld [vmem:[%s561_s3 + $0x58] sm:$0xff]  ;;  %v143_v11 = vld [vmem:[%s561_s3 + $0x50] sm:$0xff]  ;;  %v413_v22 = vmov 0.0   ;;  %s414_s23 = smov [#allocation3]  }
   0x9   :  { %344 = vmatpush3.msra.mxu0 %v36_v6  ;;  %353 = vmatpush3.msra.mxu1 %v146_v7  ;;  %v142_v12 = vld [vmem:[%s561_s3 + $0x48] sm:$0xff]  ;;  %v141_v13 = vld [vmem:[%s561_s3 + $0x40] sm:$0xff]  ;;  %v140_v14 = vld [vmem:[%s561_s3 + $0x38] sm:$0xff]  ;;  %33 = vst.msk [vmem:[#allocation2 + $0x8] sm:$0xff] %vm31_vm0, %v413_v22  ;;  %s296_s24 = sshll.u32 %s414_s23, 4  ;;  %s297_s24 = int_to_ptr.vmem [resolvable:$true] %s296_s24 }
   0xa   :  { %346 = vmatmul.mubr.msk.f32.vlgmr.msra.gmra.mxu0 %vm31_vm0, %v488_v8  ;;  %354 = vmatprep.subr.mxu1 %v145_v9  ;;  %v139_v15 = vld [vmem:[%s561_s3 + $0x30] sm:$0xff]  ;;  %v138_v16 = vld [vmem:[%s561_s3 + $0x28] sm:$0xff]  ;;  %v137_v17 = vld [vmem:[%s561_s3 + $0x20] sm:$0xff]  ;;  %32 = vst.msk [vmem:[#allocation2] sm:$0xff] %vm31_vm0, %v413_v22  ;;  %s391_s25 = scalar_lea.vmem %s297_s24, 256  ;;  %p396_p1 = scmp.lt.s32.totalorder %s297_s24, %s297_s24 }
   0xb   :  { %355 = vmatpush3.msra.mxu1 %v145_v9  ;;  %v136_v18 = vld [vmem:[%s561_s3 + $0x18] sm:$0xff]  ;;  %v135_v19 = vld [vmem:[%s561_s3 + $0x10] sm:$0xff]  ;;  %v134_v20 = vld [vmem:[%s561_s3 + $0x8] sm:$0xff]  ;;  %p392_p0 = scmp.ne.s32.totalorder %s297_s24, %s391_s25  ;;  %p397_p2 = scmp.lt.s32.totalorder %s391_s25, %s391_s25 }
   0xc   :  { %356 = vmatprep.subr.mxu1 %v144_v10  ;;  %v133_v21 = vld [vmem:[%s561_s3] sm:$0xff] }
   0xd   :  { %357 = vmatpush3.msra.mxu1 %v144_v10  ;;  %v307_v23 = vld [vmem:[%s560_s2] ss:$0 sm:$0xff]  ;;  %p398_p3 = por %p397_p2, %p396_p1 }
   0xe   :  { %358 = vmatprep.subr.mxu1 %v143_v11  ;;  %v310_v36 = vld [vmem:[%s562_s4] ss:$0 sm:$0xff] }
   0xf   :  { %359 = vmatpush3.msra.mxu1 %v143_v11  ;;  %v311_v62 = vld [vmem:[%s563_s5] ss:$0 sm:$0xff]  ;;  %p399_p4 = pnand %p398_p3, %p392_p0 }
  0x10   :  { %360 = vmatprep.subr.mxu1 %v142_v12  ;;  %v132_v30 = vld [vmem:[#allocation2 + $0x8] sm:$0xff]  ;;  %v312_v0 = vld [vmem:[%s564_s6] ss:$0 sm:$0xff] }
  0x11   :  { %361 = vmatpush3.msra.mxu1 %v142_v12  ;;  %v131_v32 = vld [vmem:[#allocation2] sm:$0xff] }
  0x12   :  { %362 = vmatprep.subr.mxu1 %v141_v13 }
  0x13   :  { %363 = vmatpush3.msra.mxu1 %v141_v13 }
  0x14   :  { %364 = vmatprep.subr.mxu1 %v140_v14 }
  0x15   :  { %365 = vmatpush3.msra.mxu1 %v140_v14 }
  0x16   :  { %366 = vmatprep.subr.mxu1 %v139_v15 }
  0x17   :  { %367 = vmatpush3.msra.mxu1 %v139_v15 }
  0x18   :  { %368 = vmatprep.subr.mxu1 %v138_v16 }
  0x19   :  { %369 = vmatpush3.msra.mxu1 %v138_v16 }
  0x1a   :  { %370 = vmatprep.subr.mxu1 %v137_v17 }
  0x1b   :  { %371 = vmatpush3.msra.mxu1 %v137_v17 }
  0x1c   :  { %372 = vmatprep.subr.mxu1 %v136_v18 }
  0x1d   :  { %373 = vmatpush3.msra.mxu1 %v136_v18 }
  0x1e   :  { %374 = vmatprep.subr.mxu1 %v135_v19 }
  0x1f   :  { %375 = vmatpush3.msra.mxu1 %v135_v19 }
  0x20   :  { %376 = vmatprep.subr.mxu1 %v134_v20 }
  0x21   :  { %377 = vmatpush3.msra.mxu1 %v134_v20 }
  0x22   :  { %378 = vmatprep.subr.mxu1 %v133_v21 }
  0x23   :  { %379 = vmatpush3.msra.mxu1 %v133_v21 }
  0xca   :  { %v347_v24 = vpop.f32.mrf.mxu0 }
  0xcb   :  { %v126_v25 = vadd.f32 %v347_v24, %v307_v23 }
  0xcc   :  { %v120_v26 = vpop.f32.mrf.mxu0 }
  0xcd   :  { %v121_v27 = vadd.f32 %v307_v23, %v120_v26  ;;  %v130_v29 = vmax.f32 %v126_v25, 0.0 }
  0xcf   :  { %v129_v28 = vmax.f32 %v121_v27, 0.0 }
  0xd1   :  { %380 = vmatprep.mubr.f32.mxu1 %v129_v28 }
  0xd2   :  { %381 = vmatmul.mubr.f32.vlgmr.msra.gmra.mxu1 %v130_v29 }
 0x192   :  { %v382_v31 = vpop.f32.mrf.mxu1 }
 0x193   :  { %v225_v33 = vadd.f32 %v382_v31, %v132_v30 }
 0x194   :  { %v215_v34 = vpop.f32.mrf.mxu1 }
 0x195   :  { %227 = vst.msk [vmem:[#allocation2 + $0x8] sm:$0xff] %vm31_vm0, %v225_v33  ;;  %v224_v35 = vadd.f32 %v215_v34, %v131_v32 }
 0x197   :  { %226 = vst.msk [vmem:[#allocation2] sm:$0xff] %vm31_vm0, %v224_v35 }
 0x19c   :  { %v232_v37 = vld [vmem:[#allocation2 + $0x8] sm:$0xff] }
 0x19d   :  { %v241_v40 = vadd.f32 %v310_v36, %v232_v37 }
 0x19e   :  { %v231_v38 = vld [vmem:[#allocation2] sm:$0xff] }
 0x19f   :  { %v240_v39 = vadd.f32 %v310_v36, %v231_v38  ;;  %v243_v43 = vadd.f32 %v241_v40, %v488_v8 }
 0x1a1   :  { %v242_v41 = vadd.f32 %v240_v39, %v466_v2  ;;  %v247_v44 = vsel %vm31_vm0, %v243_v43, 0.0 }
 0x1a3   :  { %v244_v42 = vsel %vm31_vm0, %v242_v41, 0.0 }
 0x1a4   :  { %245 = vadd.xlane.f32.xlu0 %v244_v42 }
 0x1a8   :  { %248 = vadd.xlane.f32.xlu0 %v247_v44 }
 0x22d   :  { %v246_v45 = vpop.xlane.xlu0 %245 }
 0x22e   :  { %v251_v46 = vmul.f32 0.03125, %v246_v45 }
 0x230   :  { %v253_v47 = vsub.f32 %v242_v41, %v251_v46 }
 0x231   :  { %v249_v48 = vpop.xlane.xlu0 %248 }
 0x232   :  { %v252_v49 = vmul.f32 0.03125, %v249_v48  ;;  %v255_v50 = vmul.f32 %v253_v47, %v253_v47 }
 0x234   :  { %v254_v51 = vsub.f32 %v243_v43, %v252_v49  ;;  %v257_v52 = vsel %vm31_vm0, %v255_v50, 0.0 }
 0x235   :  { %258 = vadd.xlane.f32.xlu1 %v257_v52 }
 0x236   :  { %v256_v53 = vmul.f32 %v254_v51, %v254_v51 }
 0x238   :  { %v260_v54 = vsel %vm31_vm0, %v256_v53, 0.0 }
 0x239   :  { %261 = vadd.xlane.f32.xlu1 %v260_v54 }
 0x2be   :  { %v259_v55 = vpop.xlane.xlu1 %258 }
 0x2bf   :  { %v263_v56 = vmul.f32 0.03125, %v259_v55 }
 0x2c1   :  { %v265_v57 = vadd.f32 1e-05, %v263_v56 }
 0x2c2   :  { %v262_v58 = vpop.xlane.xlu1 %261 }
 0x2c3   :  { %387 = vrsqrt.f32 %v265_v57  ;;  %v264_v59 = vmul.f32 0.03125, %v262_v58 }
 0x2c5   :  { %v266_v60 = vadd.f32 1e-05, %v264_v59 }
 0x2c7   :  { %389 = vrsqrt.f32 %v266_v60 }
 0x2d0   :  { %v388_v61 = vpop.eup %387 }
 0x2d1   :  { %v269_v63 = vmul.f32 %v388_v61, %v253_v47 }
 0x2d3   :  { %v278_v1 = vmul.f32 %v311_v62, %v269_v63 }
 0x2d4   :  { %v390_v2 = vpop.eup %389 }
 0x2d5   :  { %v270_v3 = vmul.f32 %v390_v2, %v254_v51  ;;  %v287_v4 = vadd.f32 %v312_v0, %v278_v1 }
 0x2d7   :  { %v279_v5 = vmul.f32 %v311_v62, %v270_v3  ;;  %289 = vst.msk [vmem:[#allocation3] sm:$0xff] %vm31_vm0, %v287_v4 }
 0x2d9   :  { %v288_v6 = vadd.f32 %v312_v0, %v279_v5 }
 0x2db   :  { %290 = vst.msk [vmem:[#allocation3 + $0x8] sm:$0xff] %vm31_vm0, %v288_v6 }
 0x2dc   :  { %402 = shalt.err (!%p399_p4)
}
 0x2dd   :  { %s415_s5 = smov 128   ;;  %s416_s6 = smov 8  }
 0x2de   :  { %302 = dma.vmem_to_hbm [thread:$0]  %s297_s24, 256, %s565_s7, [#allocation4], %s415_s5, %s415_s5, %s416_s6  }
 0x2df   :  { %411 = dma.done.wait [#allocation4], 256  }
 0x2e0   :  { %412 = vsyncadd [#allocation4], 4294967040 }
 0x2e1   :  { %306 = vsyncpa [#allocation4], 1 }

</bundles_post_ra>
